<compile_context>
chip_gen: v7x
topology: tpu7x:2x2x1
jax: 0.10.0
libtpu: 0.0.40
codegen_flags: <defaults>
</compile_context>

<pallas_src>
import functools
import numpy as np

import jax
import jax.numpy as jnp
from jax.experimental import pallas as pl
from jax.experimental.pallas import tpu as pltpu

# ----------------------------- configuration (small, consistent shapes) -----
CHANNELS = 32        # inner channels (4096 in the original module)
STRIDE = 4           # waveform <-> embedding stride (256 originally)
DIMENSION = 16       # embedding dimension (128 originally)
KERNEL_SIZE = 8      # first conv / last conv-transpose kernel (1024 originally)
CONTEXT_SIZE = 2     # decoder context conv kernel
REWRITE_LAYERS = 2   # number of 1x1 rewrite convs (5 originally)
BATCH = 2
SIGNAL_LEN = 64


# ----------------------------- BlockSpec helpers ----------------------------
def _rep_spec(shape):
    """Whole-array block, revisited at every grid step (weights / biases)."""
    nd = len(shape)
    return pl.BlockSpec(tuple(shape), lambda b, _nd=nd: (0,) * _nd)


def _batch_spec(shape):
    """Block = one batch row, full extent on the remaining dims."""
    nd = len(shape)
    return pl.BlockSpec((1,) + tuple(shape[1:]),
                        lambda b, _nd=nd: (b,) + (0,) * (_nd - 1))


# ----------------------------- Pallas kernels -------------------------------
def _encoder_kernel(x_ref, w0_ref, b0_ref, *rest, stride, ksize, n_rewrite):
    """Fused encoder: windowed strided conv -> ReLU -> 1x1 rewrites -> 1x1 proj.

    x_ref  : (1, n_sub, stride)   signal reshaped into stride-wide sub-frames
    w0_ref : (m, stride, CH)      first-conv weight split in m = K//stride taps
    rest   : [w_rw, b_rw] * n_rewrite, wz, bz, z_out
    """
    wz_ref, bz_ref, z_ref = rest[2 * n_rewrite:]
    rw_refs = rest[:2 * n_rewrite]

    b, n_sub, _ = x_ref.shape
    m = ksize // stride
    ch = b0_ref.shape[-1]
    dim = bz_ref.shape[-1]
    L = n_sub - m + 1

    x = x_ref[...].reshape(b * n_sub, stride)

    # First (strided, windowed) conv as m shifted matmuls — no im2col.
    acc = None
    for i in range(m):
        part = jnp.dot(x, w0_ref[i], preferred_element_type=jnp.float32)
        part = part.reshape(b, n_sub, ch)[:, i:i + L, :]
        acc = part if acc is None else acc + part
    h = acc.reshape(b * L, ch)
    h = jnp.maximum(h + b0_ref[...], 0.0)

    # 1x1 rewrite convs (ReLU fused), all VMEM-resident.
    for j in range(n_rewrite):
        w_r = rw_refs[2 * j]
        b_r = rw_refs[2 * j + 1]
        h = jnp.maximum(
            jnp.dot(h, w_r[...], preferred_element_type=jnp.float32) + b_r[...],
            0.0)

    # Final 1x1 projection to the embedding dimension (no ReLU).
    z = jnp.dot(h, wz_ref[...], preferred_element_type=jnp.float32) + bz_ref[...]
    z_ref[...] = z.reshape(b, L, dim).astype(z_ref.dtype)


def _decoder_kernel(z_ref, wc_ref, bc_ref, *rest, stride, ksize, ctx, n_rewrite):
    """Fused decoder: context conv -> ReLU -> 1x1 rewrites -> windowed
    ConvTranspose1d(stride, K, padding=K-stride) via m = K//stride shifted adds.

    z_ref  : (1, L, DIM)   embedding, channels-last
    wc_ref : (ctx, DIM, CH) context-conv weight split per tap
    rest   : [w_rw, b_rw] * n_rewrite, wtr (m, CH, stride), btr (1,1), wav_out
    """
    wtr_ref, btr_ref, wav_ref = rest[2 * n_rewrite:]
    rw_refs = rest[:2 * n_rewrite]

    b, L, dim = z_ref.shape
    ch = bc_ref.shape[-1]
    m = ksize // stride
    Ld = L - ctx + 1
    nb = Ld - m + 1  # output blocks after stripping padding = (m-1)*stride/side

    z = z_ref[...].reshape(b * L, dim)

    # Context conv as ctx shifted matmuls.
    acc = None
    for k in range(ctx):
        part = jnp.dot(z, wc_ref[k], preferred_element_type=jnp.float32)
        part = part.reshape(b, L, ch)[:, k:k + Ld, :]
        acc = part if acc is None else acc + part
    g = acc.reshape(b * Ld, ch)
    g = jnp.maximum(g + bc_ref[...], 0.0)

    # 1x1 rewrite convs (ReLU fused).
    for j in range(n_rewrite):
        w_r = rw_refs[2 * j]
        b_r = rw_refs[2 * j + 1]
        g = jnp.maximum(
            jnp.dot(g, w_r[...], preferred_element_type=jnp.float32) + b_r[...],
            0.0)

    # Windowed ConvTranspose1d: frame tap i of step t lands at output block
    # t + i of the padded buffer; cropping (m-1) blocks per side means output
    # block s gets frames[:, s + (m-1) - i, i, :].  => m wide shifted adds.
    out = None
    for i in range(m):
        fi = jnp.dot(g, wtr_ref[i], preferred_element_type=jnp.float32)
        fi = fi.reshape(b, Ld, stride)
        t0 = (m - 1) - i
        fi = fi[:, t0:t0 + nb, :]
        out = fi if out is None else out + fi
    out = out + btr_ref[...]            # scalar bias, broadcast once
    wav_ref[...] = out.astype(wav_ref.dtype)


# ----------------------------- wrappers --------------------------------------
def encode(x_bt, p):
    """x_bt: (B, T) -> z (B, L, DIM) channels-last."""
    b, t = x_bt.shape
    m = KERNEL_SIZE // STRIDE
    n_sub = t // STRIDE
    L = n_sub - m + 1
    x_rs = x_bt[:, :n_sub * STRIDE].reshape(b, n_sub, STRIDE)   # free HBM reshape

    rw_flat = [a for wb in p["enc_rw"] for a in wb]
    args = [x_rs, p["enc_w0"], p["enc_b0"], *rw_flat, p["enc_wz"], p["enc_bz"]]
    in_specs = [_batch_spec(x_rs.shape)] + [_rep_spec(a.shape) for a in args[1:]]
    kern = functools.partial(_encoder_kernel, stride=STRIDE, ksize=KERNEL_SIZE,
                             n_rewrite=len(p["enc_rw"]))
    return pl.pallas_call(
        kern,
        grid=(b,),
        in_specs=in_specs,
        out_specs=_batch_spec((b, L, DIMENSION)),
        out_shape=jax.ShapeDtypeStruct((b, L, DIMENSION), jnp.float32),
        compiler_params=pltpu.CompilerParams(dimension_semantics=("parallel",)),
    )(*args)


def decode(z_bld, p):
    """z_bld: (B, L, DIM) channels-last -> wav (B, (L-ctx+2)*stride - K)."""
    b, L, _ = z_bld.shape
    m = KERNEL_SIZE // STRIDE
    Ld = L - CONTEXT_SIZE + 1
    nb = Ld - m + 1

    rw_flat = [a for wb in p["dec_rw"] for a in wb]
    args = [z_bld, p["dec_wc"], p["dec_bc"], *rw_flat, p["dec_wtr"], p["dec_btr"]]
    in_specs = [_batch_spec(z_bld.shape)] + [_rep_spec(a.shape) for a in args[1:]]
    kern = functools.partial(_decoder_kernel, stride=STRIDE, ksize=KERNEL_SIZE,
                             ctx=CONTEXT_SIZE, n_rewrite=len(p["dec_rw"]))
    wav3 = pl.pallas_call(
        kern,
        grid=(b,),
        in_specs=in_specs,
        out_specs=_batch_spec((b, nb, STRIDE)),
        out_shape=jax.ShapeDtypeStruct((b, nb, STRIDE), jnp.float32),
        compiler_params=pltpu.CompilerParams(dimension_semantics=("parallel",)),
    )(*args)
    return wav3.reshape(b, nb * STRIDE)   # free HBM reshape


@jax.jit
def conv_ae_forward(signal, p):
    """signal: (B, 1, T) (PyTorch NCW). Returns (wav (B, Tout), z (B, DIM, L))."""
    x = signal[:, 0, :]
    z_bld = encode(x, p)                     # (B, L, DIM) channels-last
    wav = decode(z_bld, p)                   # (B, Tout)
    z = jnp.transpose(z_bld, (0, 2, 1))      # (B, DIM, L) external NCW layout
    return wav, z


# ----------------------------- parameters -----------------------------------
def hann_window_sq(k):
    n = np.arange(k, dtype=np.float64)
    win = 0.5 * (1.0 - np.cos(2.0 * np.pi * n / k))   # torch.hann_window (periodic)
    return (win ** 2).astype(np.float32)              # squared_window=True


def init_raw_params(key):
    """PyTorch-shaped parameters, deterministic (uniform +/- 1/sqrt(fan_in))."""
    keys = jax.random.split(key, 32)
    it = iter(keys)

    def u(shape, fan_in):
        bound = 1.0 / np.sqrt(fan_in)
        return jax.random.uniform(next(it), shape, jnp.float32, -bound, bound)

    raw = {}
    # --- encoder ---
    raw["e0_w"] = u((CHANNELS, 1, KERNEL_SIZE), 1 * KERNEL_SIZE)
    raw["e0_b"] = u((CHANNELS,), 1 * KERNEL_SIZE)
    raw["e_rw"] = [
        (u((CHANNELS, CHANNELS, 1), CHANNELS), u((CHANNELS,), CHANNELS))
        for _ in range(REWRITE_LAYERS)
    ]
    raw["ez_w"] = u((DIMENSION, CHANNELS, 1), CHANNELS)
    raw["ez_b"] = u((DIMENSION,), CHANNELS)
    # --- decoder ---
    raw["d0_w"] = u((CHANNELS, DIMENSION, CONTEXT_SIZE), DIMENSION * CONTEXT_SIZE)
    raw["d0_b"] = u((CHANNELS,), DIMENSION * CONTEXT_SIZE)
    raw["d_rw"] = [
        (u((CHANNELS, CHANNELS, 1), CHANNELS), u((CHANNELS,), CHANNELS))
        for _ in range(REWRITE_LAYERS)
    ]
    raw["dt_w"] = u((CHANNELS, 1, KERNEL_SIZE), CHANNELS * KERNEL_SIZE)
    raw["dt_b"] = u((1,), CHANNELS * KERNEL_SIZE)
    return raw


def derive_kernel_params(raw):
    """Fold windows / flatten kernels into matmul-ready weights (done once)."""
    win = jnp.asarray(hann_window_sq(KERNEL_SIZE))
    m = KERNEL_SIZE // STRIDE
    p = {}
    # --- encoder ---
    w0 = (raw["e0_w"][:, 0, :] * win[None, :]).T                        # (K, CH)
    p["enc_w0"] = w0.reshape(m, STRIDE, CHANNELS)                       # (m, stride, CH)
    p["enc_b0"] = raw["e0_b"].reshape(1, CHANNELS)
    p["enc_rw"] = [(w[:, :, 0].T, b.reshape(1, CHANNELS)) for (w, b) in raw["e_rw"]]
    p["enc_wz"] = raw["ez_w"][:, :, 0].T                                # (CH, DIM)
    p["enc_bz"] = raw["ez_b"].reshape(1, DIMENSION)
    # --- decoder ---
    p["dec_wc"] = jnp.transpose(raw["d0_w"], (2, 1, 0))                 # (ctx, DIM, CH)
    p["dec_bc"] = raw["d0_b"].reshape(1, CHANNELS)
    p["dec_rw"] = [(w[:, :, 0].T, b.reshape(1, CHANNELS)) for (w, b) in raw["d_rw"]]
    wtr = raw["dt_w"][:, 0, :] * win[None, :]                           # (CH, K)
    p["dec_wtr"] = wtr.reshape(CHANNELS, m, STRIDE).transpose(1, 0, 2)  # (m, CH, stride)
    p["dec_btr"] = raw["dt_b"].reshape(1, 1)
    return p


# ----------------------------- numpy reference ------------------------------
def np_conv1d(x, w, b, stride=1):
    bb, cin, t = x.shape
    cout, _, k = w.shape
    l = (t - k) // stride + 1
    out = np.zeros((bb, cout, l), dtype=np.float64)
    for ti in range(l):
        seg = x[:, :, ti * stride:ti * stride + k]
        out[:, :, ti] = np.tensordot(seg, w, axes=([1, 2], [1, 2])) + b
    return out


def np_convtr1d(y, w, b, stride, padding):
    bb, cin, l = y.shape
    _, cout, k = w.shape
    out_len = (l - 1) * stride - 2 * padding + k
    out = np.zeros((bb, cout, out_len), dtype=np.float64)
    for ti in range(l):
        contrib = np.tensordot(y[:, :, ti], w, axes=([1], [0]))  # (B, Cout, K)
        for ki in range(k):
            pos = ti * stride - padding + ki
            if 0 <= pos < out_len:
                out[:, :, pos] += contrib[:, :, ki]
    return out + b[None, :, None]


def reference_forward(signal, raw):
    f64 = lambda a: np.asarray(a, dtype=np.float64)
    x = f64(signal)
    win = f64(hann_window_sq(KERNEL_SIZE))
    h = np_conv1d(x, f64(raw["e0_w"]) * win[None, None, :], f64(raw["e0_b"]), STRIDE)
    h = np.maximum(h, 0.0)
    for (w, b) in raw["e_rw"]:
        h = np.maximum(np_conv1d(h, f64(w), f64(b)), 0.0)
    z = np_conv1d(h, f64(raw["ez_w"]), f64(raw["ez_b"]))
    g = np.maximum(np_conv1d(z, f64(raw["d0_w"]), f64(raw["d0_b"])), 0.0)
    for (w, b) in raw["d_rw"]:
        g = np.maximum(np_conv1d(g, f64(w), f64(b)), 0.0)
    wav = np_convtr1d(g, f64(raw["dt_w"]) * win[None, None, :], f64(raw["dt_b"]),
                      STRIDE, KERNEL_SIZE - STRIDE)
    return wav[:, 0, :], z


# ----------------------------- main ------------------------------------------
if __name__ == "__main__":
    signal = jax.random.normal(jax.random.PRNGKey(0), (BATCH, 1, SIGNAL_LEN), jnp.float32)
    raw = init_raw_params(jax.random.PRNGKey(1))
    params = derive_kernel_params(raw)

    wav, z = conv_ae_forward(signal, params)
    wav = jax.block_until_ready(wav)
    z = jax.block_until_ready(z)

    wav_ref, z_ref = reference_forward(np.asarray(signal), raw)

    L = (SIGNAL_LEN - KERNEL_SIZE) // STRIDE + 1                      # 15
    out_len = (L - CONTEXT_SIZE + 2) * STRIDE - KERNEL_SIZE           # 52
    assert wav.shape == (BATCH, out_len), wav.shape
    assert z.shape == (BATCH, DIMENSION, L), z.shape
    assert wav_ref.shape == wav.shape, (wav_ref.shape, wav.shape)
    np.testing.assert_allclose(np.asarray(z), z_ref, rtol=2e-2, atol=2e-2)
    np.testing.assert_allclose(np.asarray(wav), wav_ref, rtol=2e-2, atol=2e-2)

    print("KERNEL_OK")
</pallas_src>

<mosaic_0001>
module attributes {stable_mosaic.version = 11 : i64} {
  func.func @_encoder_kernel(%arg0: i32, %arg1: memref<1x16x4xf32, #tpu.memory_space<vmem>>, %arg2: memref<2x4x32xf32, #tpu.memory_space<vmem>>, %arg3: memref<1x32xf32, #tpu.memory_space<vmem>>, %arg4: memref<32x32xf32, #tpu.memory_space<vmem>>, %arg5: memref<1x32xf32, #tpu.memory_space<vmem>>, %arg6: memref<32x32xf32, #tpu.memory_space<vmem>>, %arg7: memref<1x32xf32, #tpu.memory_space<vmem>>, %arg8: memref<32x16xf32, #tpu.memory_space<vmem>>, %arg9: memref<1x16xf32, #tpu.memory_space<vmem>>, %arg10: memref<1x15x16xf32, #tpu.memory_space<vmem>>) attributes {dimension_semantics = [#tpu.dimension_semantics<parallel>], iteration_bounds = array<i64: 2>, scalar_prefetch = 0 : i64, scratch_operands = 0 : i64, tpu.core_type = #tpu.core_type<tc>, window_params = [{transform_indices = @transform_0, window_bounds = array<i64: 1, 16, 4>}, {pipeline_mode = #tpu.pipeline_mode<synchronous>, transform_indices = @transform_1, window_bounds = array<i64: 2, 4, 32>}, {pipeline_mode = #tpu.pipeline_mode<synchronous>, transform_indices = @transform_2, window_bounds = array<i64: 1, 32>}, {pipeline_mode = #tpu.pipeline_mode<synchronous>, transform_indices = @transform_3, window_bounds = array<i64: 32, 32>}, {pipeline_mode = #tpu.pipeline_mode<synchronous>, transform_indices = @transform_4, window_bounds = array<i64: 1, 32>}, {pipeline_mode = #tpu.pipeline_mode<synchronous>, transform_indices = @transform_5, window_bounds = array<i64: 32, 32>}, {pipeline_mode = #tpu.pipeline_mode<synchronous>, transform_indices = @transform_6, window_bounds = array<i64: 1, 32>}, {pipeline_mode = #tpu.pipeline_mode<synchronous>, transform_indices = @transform_7, window_bounds = array<i64: 32, 16>}, {pipeline_mode = #tpu.pipeline_mode<synchronous>, transform_indices = @transform_8, window_bounds = array<i64: 1, 16>}, {transform_indices = @transform_9, window_bounds = array<i64: 1, 15, 16>}]} {
    %c0 = arith.constant 0 : index
    %c0_0 = arith.constant 0 : index
    %c0_1 = arith.constant 0 : index
    %0 = vector.load %arg1[%c0, %c0_0, %c0_1] : memref<1x16x4xf32, #tpu.memory_space<vmem>>, vector<1x16x4xf32>
    %1 = vector.shape_cast %0 : vector<1x16x4xf32> to vector<16x4xf32>
    %c0_2 = arith.constant 0 : index
    %c0_3 = arith.constant 0 : index
    %c0_4 = arith.constant 0 : index
    %2 = vector.load %arg2[%c0_2, %c0_3, %c0_4] : memref<2x4x32xf32, #tpu.memory_space<vmem>>, vector<1x4x32xf32>
    %3 = vector.shape_cast %2 : vector<1x4x32xf32> to vector<4x32xf32>
    %cst = arith.constant dense<0.000000e+00> : vector<16x32xf32>
    %4 = tpu.matmul %1, %3, %cst {dimension_numbers = #tpu.dot_dimension_numbers<[1], [0], [0], [1], [0, 0, 1, 1], [], []>} : vector<16x4xf32>, vector<4x32xf32>, vector<16x32xf32> -> vector<16x32xf32>
    %5 = vector.shape_cast %4 : vector<16x32xf32> to vector<1x16x32xf32>
    %6 = vector.extract_strided_slice %5 {offsets = [0, 0, 0], sizes = [1, 15, 32], strides = [1, 1, 1]} : vector<1x16x32xf32> to vector<1x15x32xf32>
    %c1 = arith.constant 1 : index
    %c0_5 = arith.constant 0 : index
    %c0_6 = arith.constant 0 : index
    %7 = vector.load %arg2[%c1, %c0_5, %c0_6] : memref<2x4x32xf32, #tpu.memory_space<vmem>>, vector<1x4x32xf32>
    %8 = vector.shape_cast %7 : vector<1x4x32xf32> to vector<4x32xf32>
    %cst_7 = arith.constant dense<0.000000e+00> : vector<16x32xf32>
    %9 = tpu.matmul %1, %8, %cst_7 {dimension_numbers = #tpu.dot_dimension_numbers<[1], [0], [0], [1], [0, 0, 1, 1], [], []>} : vector<16x4xf32>, vector<4x32xf32>, vector<16x32xf32> -> vector<16x32xf32>
    %10 = vector.shape_cast %9 : vector<16x32xf32> to vector<1x16x32xf32>
    %11 = vector.extract_strided_slice %10 {offsets = [0, 1, 0], sizes = [1, 15, 32], strides = [1, 1, 1]} : vector<1x16x32xf32> to vector<1x15x32xf32>
    %12 = arith.addf %6, %11 : vector<1x15x32xf32>
    %13 = vector.shape_cast %12 : vector<1x15x32xf32> to vector<15x32xf32>
    %c0_8 = arith.constant 0 : index
    %c0_9 = arith.constant 0 : index
    %14 = vector.load %arg3[%c0_8, %c0_9] : memref<1x32xf32, #tpu.memory_space<vmem>>, vector<1x32xf32>
    %15 = vector.broadcast %14 : vector<1x32xf32> to vector<15x32xf32>
    %16 = arith.addf %13, %15 : vector<15x32xf32>
    %cst_10 = arith.constant 0.000000e+00 : f32
    %17 = vector.broadcast %cst_10 : f32 to vector<15x32xf32>
    %18 = arith.maximumf %16, %17 : vector<15x32xf32>
    %c0_11 = arith.constant 0 : index
    %c0_12 = arith.constant 0 : index
    %19 = vector.load %arg4[%c0_11, %c0_12] : memref<32x32xf32, #tpu.memory_space<vmem>>, vector<32x32xf32>
    %cst_13 = arith.constant dense<0.000000e+00> : vector<15x32xf32>
    %20 = tpu.matmul %18, %19, %cst_13 {dimension_numbers = #tpu.dot_dimension_numbers<[1], [0], [0], [1], [0, 0, 1, 1], [], []>} : vector<15x32xf32>, vector<32x32xf32>, vector<15x32xf32> -> vector<15x32xf32>
    %c0_14 = arith.constant 0 : index
    %c0_15 = arith.constant 0 : index
    %21 = vector.load %arg5[%c0_14, %c0_15] : memref<1x32xf32, #tpu.memory_space<vmem>>, vector<1x32xf32>
    %22 = vector.broadcast %21 : vector<1x32xf32> to vector<15x32xf32>
    %23 = arith.addf %20, %22 : vector<15x32xf32>
    %cst_16 = arith.constant 0.000000e+00 : f32
    %24 = vector.broadcast %cst_16 : f32 to vector<15x32xf32>
    %25 = arith.maximumf %23, %24 : vector<15x32xf32>
    %c0_17 = arith.constant 0 : index
    %c0_18 = arith.constant 0 : index
    %26 = vector.load %arg6[%c0_17, %c0_18] : memref<32x32xf32, #tpu.memory_space<vmem>>, vector<32x32xf32>
    %cst_19 = arith.constant dense<0.000000e+00> : vector<15x32xf32>
    %27 = tpu.matmul %25, %26, %cst_19 {dimension_numbers = #tpu.dot_dimension_numbers<[1], [0], [0], [1], [0, 0, 1, 1], [], []>} : vector<15x32xf32>, vector<32x32xf32>, vector<15x32xf32> -> vector<15x32xf32>
    %c0_20 = arith.constant 0 : index
    %c0_21 = arith.constant 0 : index
    %28 = vector.load %arg7[%c0_20, %c0_21] : memref<1x32xf32, #tpu.memory_space<vmem>>, vector<1x32xf32>
    %29 = vector.broadcast %28 : vector<1x32xf32> to vector<15x32xf32>
    %30 = arith.addf %27, %29 : vector<15x32xf32>
    %cst_22 = arith.constant 0.000000e+00 : f32
    %31 = vector.broadcast %cst_22 : f32 to vector<15x32xf32>
    %32 = arith.maximumf %30, %31 : vector<15x32xf32>
    %c0_23 = arith.constant 0 : index
    %c0_24 = arith.constant 0 : index
    %33 = vector.load %arg8[%c0_23, %c0_24] : memref<32x16xf32, #tpu.memory_space<vmem>>, vector<32x16xf32>
    %cst_25 = arith.constant dense<0.000000e+00> : vector<15x16xf32>
    %34 = tpu.matmul %32, %33, %cst_25 {dimension_numbers = #tpu.dot_dimension_numbers<[1], [0], [0], [1], [0, 0, 1, 1], [], []>} : vector<15x32xf32>, vector<32x16xf32>, vector<15x16xf32> -> vector<15x16xf32>
    %c0_26 = arith.constant 0 : index
    %c0_27 = arith.constant 0 : index
    %35 = vector.load %arg9[%c0_26, %c0_27] : memref<1x16xf32, #tpu.memory_space<vmem>>, vector<1x16xf32>
    %36 = vector.broadcast %35 : vector<1x16xf32> to vector<15x16xf32>
    %37 = arith.addf %34, %36 : vector<15x16xf32>
    %38 = vector.shape_cast %37 : vector<15x16xf32> to vector<1x15x16xf32>
    %c0_28 = arith.constant 0 : index
    %c0_29 = arith.constant 0 : index
    %c0_30 = arith.constant 0 : index
    %39 = vector.load %arg10[%c0_28, %c0_29, %c0_30] : memref<1x15x16xf32, #tpu.memory_space<vmem>>, vector<1x15x16xf32>
    tpu.vector_store %arg10[%c0_28, %c0_29, %c0_30], %38 {strides = array<i32>} : memref<1x15x16xf32, #tpu.memory_space<vmem>>, vector<1x15x16xf32>,
    return
  }
  func.func @transform_0(%arg0: i32) -> (i32, i32, i32) {
    %c0_i32 = arith.constant 0 : i32
    %c0_i32_0 = arith.constant 0 : i32
    %c0_i32_1 = arith.constant 0 : i32
    return %arg0, %c0_i32, %c0_i32_0 : i32, i32, i32
  }
  func.func @transform_1(%arg0: i32) -> (i32, i32, i32) {
    %c0_i32 = arith.constant 0 : i32
    %c0_i32_0 = arith.constant 0 : i32
    %c0_i32_1 = arith.constant 0 : i32
    %c0_i32_2 = arith.constant 0 : i32
    return %c0_i32, %c0_i32_0, %c0_i32_1 : i32, i32, i32
  }
  func.func @transform_2(%arg0: i32) -> (i32, i32) {
    %c0_i32 = arith.constant 0 : i32
    %c0_i32_0 = arith.constant 0 : i32
    %c0_i32_1 = arith.constant 0 : i32
    return %c0_i32, %c0_i32_0 : i32, i32
  }
  func.func @transform_3(%arg0: i32) -> (i32, i32) {
    %c0_i32 = arith.constant 0 : i32
    %c0_i32_0 = arith.constant 0 : i32
    %c0_i32_1 = arith.constant 0 : i32
    return %c0_i32, %c0_i32_0 : i32, i32
  }
  func.func @transform_4(%arg0: i32) -> (i32, i32) {
    %c0_i32 = arith.constant 0 : i32
    %c0_i32_0 = arith.constant 0 : i32
    %c0_i32_1 = arith.constant 0 : i32
    return %c0_i32, %c0_i32_0 : i32, i32
  }
  func.func @transform_5(%arg0: i32) -> (i32, i32) {
    %c0_i32 = arith.constant 0 : i32
    %c0_i32_0 = arith.constant 0 : i32
    %c0_i32_1 = arith.constant 0 : i32
    return %c0_i32, %c0_i32_0 : i32, i32
  }
  func.func @transform_6(%arg0: i32) -> (i32, i32) {
    %c0_i32 = arith.constant 0 : i32
    %c0_i32_0 = arith.constant 0 : i32
    %c0_i32_1 = arith.constant 0 : i32
    return %c0_i32, %c0_i32_0 : i32, i32
  }
  func.func @transform_7(%arg0: i32) -> (i32, i32) {
    %c0_i32 = arith.constant 0 : i32
    %c0_i32_0 = arith.constant 0 : i32
    %c0_i32_1 = arith.constant 0 : i32
    return %c0_i32, %c0_i32_0 : i32, i32
  }
  func.func @transform_8(%arg0: i32) -> (i32, i32) {
    %c0_i32 = arith.constant 0 : i32
    %c0_i32_0 = arith.constant 0 : i32
    %c0_i32_1 = arith.constant 0 : i32
    return %c0_i32, %c0_i32_0 : i32, i32
  }
  func.func @transform_9(%arg0: i32) -> (i32, i32, i32) {
    %c0_i32 = arith.constant 0 : i32
    %c0_i32_0 = arith.constant 0 : i32
    %c0_i32_1 = arith.constant 0 : i32
    return %arg0, %c0_i32, %c0_i32_0 : i32, i32, i32
  }
}

module attributes {stable_mosaic.version = 11 : i64} {
  func.func @_decoder_kernel(%arg0: i32, %arg1: memref<1x15x16xf32, #tpu.memory_space<vmem>>, %arg2: memref<2x16x32xf32, #tpu.memory_space<vmem>>, %arg3: memref<1x32xf32, #tpu.memory_space<vmem>>, %arg4: memref<32x32xf32, #tpu.memory_space<vmem>>, %arg5: memref<1x32xf32, #tpu.memory_space<vmem>>, %arg6: memref<32x32xf32, #tpu.memory_space<vmem>>, %arg7: memref<1x32xf32, #tpu.memory_space<vmem>>, %arg8: memref<2x32x4xf32, #tpu.memory_space<vmem>>, %arg9: memref<1x1xf32, #tpu.memory_space<vmem>>, %arg10: memref<1x13x4xf32, #tpu.memory_space<vmem>>) attributes {dimension_semantics = [#tpu.dimension_semantics<parallel>], iteration_bounds = array<i64: 2>, scalar_prefetch = 0 : i64, scratch_operands = 0 : i64, tpu.core_type = #tpu.core_type<tc>, window_params = [{transform_indices = @transform_0, window_bounds = array<i64: 1, 15, 16>}, {pipeline_mode = #tpu.pipeline_mode<synchronous>, transform_indices = @transform_1, window_bounds = array<i64: 2, 16, 32>}, {pipeline_mode = #tpu.pipeline_mode<synchronous>, transform_indices = @transform_2, window_bounds = array<i64: 1, 32>}, {pipeline_mode = #tpu.pipeline_mode<synchronous>, transform_indices = @transform_3, window_bounds = array<i64: 32, 32>}, {pipeline_mode = #tpu.pipeline_mode<synchronous>, transform_indices = @transform_4, window_bounds = array<i64: 1, 32>}, {pipeline_mode = #tpu.pipeline_mode<synchronous>, transform_indices = @transform_5, window_bounds = array<i64: 32, 32>}, {pipeline_mode = #tpu.pipeline_mode<synchronous>, transform_indices = @transform_6, window_bounds = array<i64: 1, 32>}, {pipeline_mode = #tpu.pipeline_mode<synchronous>, transform_indices = @transform_7, window_bounds = array<i64: 2, 32, 4>}, {pipeline_mode = #tpu.pipeline_mode<synchronous>, transform_indices = @transform_8, window_bounds = array<i64: 1, 1>}, {transform_indices = @transform_9, window_bounds = array<i64: 1, 13, 4>}]} {
    %c0 = arith.constant 0 : index
    %c0_0 = arith.constant 0 : index
    %c0_1 = arith.constant 0 : index
    %0 = vector.load %arg1[%c0, %c0_0, %c0_1] : memref<1x15x16xf32, #tpu.memory_space<vmem>>, vector<1x15x16xf32>
    %1 = vector.shape_cast %0 : vector<1x15x16xf32> to vector<15x16xf32>
    %c0_2 = arith.constant 0 : index
    %c0_3 = arith.constant 0 : index
    %c0_4 = arith.constant 0 : index
    %2 = vector.load %arg2[%c0_2, %c0_3, %c0_4] : memref<2x16x32xf32, #tpu.memory_space<vmem>>, vector<1x16x32xf32>
    %3 = vector.shape_cast %2 : vector<1x16x32xf32> to vector<16x32xf32>
    %cst = arith.constant dense<0.000000e+00> : vector<15x32xf32>
    %4 = tpu.matmul %1, %3, %cst {dimension_numbers = #tpu.dot_dimension_numbers<[1], [0], [0], [1], [0, 0, 1, 1], [], []>} : vector<15x16xf32>, vector<16x32xf32>, vector<15x32xf32> -> vector<15x32xf32>
    %5 = vector.shape_cast %4 : vector<15x32xf32> to vector<1x15x32xf32>
    %6 = vector.extract_strided_slice %5 {offsets = [0, 0, 0], sizes = [1, 14, 32], strides = [1, 1, 1]} : vector<1x15x32xf32> to vector<1x14x32xf32>
    %c1 = arith.constant 1 : index
    %c0_5 = arith.constant 0 : index
    %c0_6 = arith.constant 0 : index
    %7 = vector.load %arg2[%c1, %c0_5, %c0_6] : memref<2x16x32xf32, #tpu.memory_space<vmem>>, vector<1x16x32xf32>
    %8 = vector.shape_cast %7 : vector<1x16x32xf32> to vector<16x32xf32>
    %cst_7 = arith.constant dense<0.000000e+00> : vector<15x32xf32>
    %9 = tpu.matmul %1, %8, %cst_7 {dimension_numbers = #tpu.dot_dimension_numbers<[1], [0], [0], [1], [0, 0, 1, 1], [], []>} : vector<15x16xf32>, vector<16x32xf32>, vector<15x32xf32> -> vector<15x32xf32>
    %10 = vector.shape_cast %9 : vector<15x32xf32> to vector<1x15x32xf32>
    %11 = vector.extract_strided_slice %10 {offsets = [0, 1, 0], sizes = [1, 14, 32], strides = [1, 1, 1]} : vector<1x15x32xf32> to vector<1x14x32xf32>
    %12 = arith.addf %6, %11 : vector<1x14x32xf32>
    %13 = vector.shape_cast %12 : vector<1x14x32xf32> to vector<14x32xf32>
    %c0_8 = arith.constant 0 : index
    %c0_9 = arith.constant 0 : index
    %14 = vector.load %arg3[%c0_8, %c0_9] : memref<1x32xf32, #tpu.memory_space<vmem>>, vector<1x32xf32>
    %15 = vector.broadcast %14 : vector<1x32xf32> to vector<14x32xf32>
    %16 = arith.addf %13, %15 : vector<14x32xf32>
    %cst_10 = arith.constant 0.000000e+00 : f32
    %17 = vector.broadcast %cst_10 : f32 to vector<14x32xf32>
    %18 = arith.maximumf %16, %17 : vector<14x32xf32>
    %c0_11 = arith.constant 0 : index
    %c0_12 = arith.constant 0 : index
    %19 = vector.load %arg4[%c0_11, %c0_12] : memref<32x32xf32, #tpu.memory_space<vmem>>, vector<32x32xf32>
    %cst_13 = arith.constant dense<0.000000e+00> : vector<14x32xf32>
    %20 = tpu.matmul %18, %19, %cst_13 {dimension_numbers = #tpu.dot_dimension_numbers<[1], [0], [0], [1], [0, 0, 1, 1], [], []>} : vector<14x32xf32>, vector<32x32xf32>, vector<14x32xf32> -> vector<14x32xf32>
    %c0_14 = arith.constant 0 : index
    %c0_15 = arith.constant 0 : index
    %21 = vector.load %arg5[%c0_14, %c0_15] : memref<1x32xf32, #tpu.memory_space<vmem>>, vector<1x32xf32>
    %22 = vector.broadcast %21 : vector<1x32xf32> to vector<14x32xf32>
    %23 = arith.addf %20, %22 : vector<14x32xf32>
    %cst_16 = arith.constant 0.000000e+00 : f32
    %24 = vector.broadcast %cst_16 : f32 to vector<14x32xf32>
    %25 = arith.maximumf %23, %24 : vector<14x32xf32>
    %c0_17 = arith.constant 0 : index
    %c0_18 = arith.constant 0 : index
    %26 = vector.load %arg6[%c0_17, %c0_18] : memref<32x32xf32, #tpu.memory_space<vmem>>, vector<32x32xf32>
    %cst_19 = arith.constant dense<0.000000e+00> : vector<14x32xf32>
    %27 = tpu.matmul %25, %26, %cst_19 {dimension_numbers = #tpu.dot_dimension_numbers<[1], [0], [0], [1], [0, 0, 1, 1], [], []>} : vector<14x32xf32>, vector<32x32xf32>, vector<14x32xf32> -> vector<14x32xf32>
    %c0_20 = arith.constant 0 : index
    %c0_21 = arith.constant 0 : index
    %28 = vector.load %arg7[%c0_20, %c0_21] : memref<1x32xf32, #tpu.memory_space<vmem>>, vector<1x32xf32>
    %29 = vector.broadcast %28 : vector<1x32xf32> to vector<14x32xf32>
    %30 = arith.addf %27, %29 : vector<14x32xf32>
    %cst_22 = arith.constant 0.000000e+00 : f32
    %31 = vector.broadcast %cst_22 : f32 to vector<14x32xf32>
    %32 = arith.maximumf %30, %31 : vector<14x32xf32>
    %c0_23 = arith.constant 0 : index
    %c0_24 = arith.constant 0 : index
    %c0_25 = arith.constant 0 : index
    %33 = vector.load %arg8[%c0_23, %c0_24, %c0_25] : memref<2x32x4xf32, #tpu.memory_space<vmem>>, vector<1x32x4xf32>
    %34 = vector.shape_cast %33 : vector<1x32x4xf32> to vector<32x4xf32>
    %cst_26 = arith.constant dense<0.000000e+00> : vector<14x4xf32>
    %35 = tpu.matmul %32, %34, %cst_26 {dimension_numbers = #tpu.dot_dimension_numbers<[1], [0], [0], [1], [0, 0, 1, 1], [], []>} : vector<14x32xf32>, vector<32x4xf32>, vector<14x4xf32> -> vector<14x4xf32>
    %36 = vector.shape_cast %35 : vector<14x4xf32> to vector<1x14x4xf32>
    %37 = vector.extract_strided_slice %36 {offsets = [0, 1, 0], sizes = [1, 13, 4], strides = [1, 1, 1]} : vector<1x14x4xf32> to vector<1x13x4xf32>
    %c1_27 = arith.constant 1 : index
    %c0_28 = arith.constant 0 : index
    %c0_29 = arith.constant 0 : index
    %38 = vector.load %arg8[%c1_27, %c0_28, %c0_29] : memref<2x32x4xf32, #tpu.memory_space<vmem>>, vector<1x32x4xf32>
    %39 = vector.shape_cast %38 : vector<1x32x4xf32> to vector<32x4xf32>
    %cst_30 = arith.constant dense<0.000000e+00> : vector<14x4xf32>
    %40 = tpu.matmul %32, %39, %cst_30 {dimension_numbers = #tpu.dot_dimension_numbers<[1], [0], [0], [1], [0, 0, 1, 1], [], []>} : vector<14x32xf32>, vector<32x4xf32>, vector<14x4xf32> -> vector<14x4xf32>
    %41 = vector.shape_cast %40 : vector<14x4xf32> to vector<1x14x4xf32>
    %42 = vector.extract_strided_slice %41 {offsets = [0, 0, 0], sizes = [1, 13, 4], strides = [1, 1, 1]} : vector<1x14x4xf32> to vector<1x13x4xf32>
    %43 = arith.addf %37, %42 : vector<1x13x4xf32>
    %c0_31 = arith.constant 0 : index
    %c0_32 = arith.constant 0 : index
    %44 = vector.load %arg9[%c0_31, %c0_32] : memref<1x1xf32, #tpu.memory_space<vmem>>, vector<1x1xf32>
    %45 = vector.shape_cast %44 : vector<1x1xf32> to vector<1x1x1xf32>
    %46 = vector.broadcast %45 : vector<1x1x1xf32> to vector<1x13x4xf32>
    %47 = arith.addf %43, %46 : vector<1x13x4xf32>
    %c0_33 = arith.constant 0 : index
    %c0_34 = arith.constant 0 : index
    %c0_35 = arith.constant 0 : index
    %48 = vector.load %arg10[%c0_33, %c0_34, %c0_35] : memref<1x13x4xf32, #tpu.memory_space<vmem>>, vector<1x13x4xf32>
    tpu.vector_store %arg10[%c0_33, %c0_34, %c0_35], %47 {strides = array<i32>} : memref<1x13x4xf32, #tpu.memory_space<vmem>>, vector<1x13x4xf32>,
    return
  }
  func.func @transform_0(%arg0: i32) -> (i32, i32, i32) {
    %c0_i32 = arith.constant 0 : i32
    %c0_i32_0 = arith.constant 0 : i32
    %c0_i32_1 = arith.constant 0 : i32
    return %arg0, %c0_i32, %c0_i32_0 : i32, i32, i32
  }
  func.func @transform_1(%arg0: i32) -> (i32, i32, i32) {
    %c0_i32 = arith.constant 0 : i32
    %c0_i32_0 = arith.constant 0 : i32
    %c0_i32_1 = arith.constant 0 : i32
    %c0_i32_2 = arith.constant 0 : i32
    return %c0_i32, %c0_i32_0, %c0_i32_1 : i32, i32, i32
  }
  func.func @transform_2(%arg0: i32) -> (i32, i32) {
    %c0_i32 = arith.constant 0 : i32
    %c0_i32_0 = arith.constant 0 : i32
    %c0_i32_1 = arith.constant 0 : i32
    return %c0_i32, %c0_i32_0 : i32, i32
  }
  func.func @transform_3(%arg0: i32) -> (i32, i32) {
    %c0_i32 = arith.constant 0 : i32
    %c0_i32_0 = arith.constant 0 : i32
    %c0_i32_1 = arith.constant 0 : i32
    return %c0_i32, %c0_i32_0 : i32, i32
  }
  func.func @transform_4(%arg0: i32) -> (i32, i32) {
    %c0_i32 = arith.constant 0 : i32
    %c0_i32_0 = arith.constant 0 : i32
    %c0_i32_1 = arith.constant 0 : i32
    return %c0_i32, %c0_i32_0 : i32, i32
  }
  func.func @transform_5(%arg0: i32) -> (i32, i32) {
    %c0_i32 = arith.constant 0 : i32
    %c0_i32_0 = arith.constant 0 : i32
    %c0_i32_1 = arith.constant 0 : i32
    return %c0_i32, %c0_i32_0 : i32, i32
  }
  func.func @transform_6(%arg0: i32) -> (i32, i32) {
    %c0_i32 = arith.constant 0 : i32
    %c0_i32_0 = arith.constant 0 : i32
    %c0_i32_1 = arith.constant 0 : i32
    return %c0_i32, %c0_i32_0 : i32, i32
  }
  func.func @transform_7(%arg0: i32) -> (i32, i32, i32) {
    %c0_i32 = arith.constant 0 : i32
    %c0_i32_0 = arith.constant 0 : i32
    %c0_i32_1 = arith.constant 0 : i32
    %c0_i32_2 = arith.constant 0 : i32
    return %c0_i32, %c0_i32_0, %c0_i32_1 : i32, i32, i32
  }
  func.func @transform_8(%arg0: i32) -> (i32, i32) {
    %c0_i32 = arith.constant 0 : i32
    %c0_i32_0 = arith.constant 0 : i32
    %c0_i32_1 = arith.constant 0 : i32
    return %c0_i32, %c0_i32_0 : i32, i32
  }
  func.func @transform_9(%arg0: i32) -> (i32, i32, i32) {
    %c0_i32 = arith.constant 0 : i32
    %c0_i32_0 = arith.constant 0 : i32
    %c0_i32_1 = arith.constant 0 : i32
    return %arg0, %c0_i32, %c0_i32_0 : i32, i32, i32
  }
}

</mosaic_0001>

<bundles_post_ra>
// kernel: squeeze.1
= control target key start
LH: loop header
LB: loop body
LE: loop exit
PB: predicated region body
PF: predicated region fallthrough
CT: control target
= control target key end

     0   :  { %s130_s8 = smov 116   ;;  %s131_s9 = smov 120   ;;  %vm7_vm0 = vcmask 31744   ;;  %s221_s0 = inlined_call_operand.vmem [shape: f32[2,64], index: 0, kind: input, shape index: {}]   ;;  %s222_s1 = inlined_call_operand.vmem [shape: f32[2,16,4], index: 1, kind: output, shape index: {}]  }
   0x1   :  { %v4_v0 = vld [vmem:[%s221_s0] sm:$0x3]  ;;  %s129_s0 = smov 124   ;;  %s132_s10 = smov 112  }
   0x2   :  { %5 = vst [vmem:[#allocation0] sm:$0x3] %v4_v0  ;;  %s133_s11 = smov 108   ;;  %s134_s12 = smov 104  }
   0x3   :  { %s135_s13 = smov 100   ;;  %s136_s14 = smov 96  }
   0x4   :  { %s137_s17 = smov 92   ;;  %s138_s18 = smov 88  }
   0x5   :  { %s139_s19 = smov 84   ;;  %s140_s20 = smov 80  }
   0x6   :  { %s141_s21 = smov 76   ;;  %s142_s22 = smov 72  }
   0x7   :  { %s143_s23 = smov 68  }
   0x9   :  { %v9_v1 = vld [vmem:[#allocation0] sm:$0x3]  }
   0xa   :  { %v21_v2 = vld [vmem:[#allocation0] sm:$0x3]   ;;  %10 = vrot.lane.b32.xlu0 %v9_v1, %s129_s0 }
   0xb   :  { %22 = vrot.lane.b32.xlu1 %v21_v2, %s130_s8  ;;  %v15_v3 = vld [vmem:[#allocation0] sm:$0x3]  }
   0xc   :  { %v27_v4 = vld [vmem:[#allocation0] sm:$0x3]  }
   0xd   :  { %v33_v5 = vld [vmem:[#allocation0] sm:$0x3]  }
   0xe   :  { %16 = vrot.lane.b32.xlu0 %v15_v3, %s131_s9  ;;  %v39_v6 = vld [vmem:[#allocation0] sm:$0x3]  }
   0xf   :  { %28 = vrot.lane.b32.xlu1 %v27_v4, %s132_s10  ;;  %v45_v7 = vld [vmem:[#allocation0] sm:$0x3]  }
  0x10   :  { %v51_v8 = vld [vmem:[#allocation0] sm:$0x3]  }
  0x11   :  { %v57_v9 = vld [vmem:[#allocation0] sm:$0x3]  }
  0x12   :  { %34 = vrot.lane.b32.xlu0 %v33_v5, %s133_s11  ;;  %v63_v10 = vld [vmem:[#allocation0] sm:$0x3]  }
  0x13   :  { %40 = vrot.lane.b32.xlu1 %v39_v6, %s134_s12  ;;  %v6_v11 = vld [vmem:[#allocation0] sm:$0x3]  }
  0x14   :  { %8 = vst.msk [vmem:[%s222_s1] ss:$16 sm:$0x3] %vm7_vm0, %v6_v11   ;;  %v69_v12 = vld [vmem:[#allocation0] sm:$0x3]  }
  0x15   :  { %v75_v13 = vld [vmem:[#allocation0] sm:$0x3]  }
  0x16   :  { %46 = vrot.lane.b32.xlu0 %v45_v7, %s135_s13  ;;  %v81_v14 = vld [vmem:[#allocation0] sm:$0x3]  }
  0x17   :  { %52 = vrot.lane.b32.xlu1 %v51_v8, %s136_s14  ;;  %v87_v15 = vld [vmem:[#allocation0] sm:$0x3]  }
  0x18   :  { %v93_v16 = vld [vmem:[#allocation0] sm:$0x3]  }
  0x1a   :  { %58 = vrot.lane.b32.xlu0 %v57_v9, %s137_s17 }
  0x1b   :  { %64 = vrot.lane.b32.xlu1 %v63_v10, %s138_s18 }
  0x1e   :  { %70 = vrot.lane.b32.xlu0 %v69_v12, %s139_s19 }
  0x1f   :  { %76 = vrot.lane.b32.xlu1 %v75_v13, %s140_s20 }
  0x22   :  { %82 = vrot.lane.b32.xlu0 %v81_v14, %s141_s21 }
  0x23   :  { %88 = vrot.lane.b32.xlu1 %v87_v15, %s142_s22 }
  0x26   :  { %94 = vrot.lane.b32.xlu0 %v93_v16, %s143_s23 }
  0x7c   :  { %v11_v17 = vpop.permute.xlu0 %10  }
  0x7d   :  { %v23_v18 = vpop.permute.xlu1 %22   ;;  %99 = vst.msk [vmem:[%s222_s1 + $0x1] ss:$16 sm:$0x3] %vm7_vm0, %v11_v17  }
  0x7e   :  { %101 = vst.msk [vmem:[%s222_s1 + $0x3] ss:$16 sm:$0x3] %vm7_vm0, %v23_v18  }
  0x80   :  { %v17_v19 = vpop.permute.xlu0 %16  }
  0x81   :  { %v29_v20 = vpop.permute.xlu1 %28   ;;  %100 = vst.msk [vmem:[%s222_s1 + $0x2] ss:$16 sm:$0x3] %vm7_vm0, %v17_v19  }
  0x82   :  { %102 = vst.msk [vmem:[%s222_s1 + $0x4] ss:$16 sm:$0x3] %vm7_vm0, %v29_v20  }
  0x84   :  { %v35_v21 = vpop.permute.xlu0 %34  }
  0x85   :  { %v41_v22 = vpop.permute.xlu1 %40   ;;  %103 = vst.msk [vmem:[%s222_s1 + $0x5] ss:$16 sm:$0x3] %vm7_vm0, %v35_v21  }
  0x86   :  { %104 = vst.msk [vmem:[%s222_s1 + $0x6] ss:$16 sm:$0x3] %vm7_vm0, %v41_v22  }
  0x88   :  { %v47_v23 = vpop.permute.xlu0 %46  }
  0x89   :  { %v53_v24 = vpop.permute.xlu1 %52   ;;  %105 = vst.msk [vmem:[%s222_s1 + $0x7] ss:$16 sm:$0x3] %vm7_vm0, %v47_v23  }
  0x8a   :  { %106 = vst.msk [vmem:[%s222_s1 + $0x8] ss:$16 sm:$0x3] %vm7_vm0, %v53_v24  }
  0x8c   :  { %v59_v25 = vpop.permute.xlu0 %58  }
  0x8d   :  { %v65_v26 = vpop.permute.xlu1 %64   ;;  %107 = vst.msk [vmem:[%s222_s1 + $0x9] ss:$16 sm:$0x3] %vm7_vm0, %v59_v25  }
  0x8e   :  { %108 = vst.msk [vmem:[%s222_s1 + $0xa] ss:$16 sm:$0x3] %vm7_vm0, %v65_v26  }
  0x90   :  { %v71_v27 = vpop.permute.xlu0 %70  }
  0x91   :  { %v77_v28 = vpop.permute.xlu1 %76   ;;  %109 = vst.msk [vmem:[%s222_s1 + $0xb] ss:$16 sm:$0x3] %vm7_vm0, %v71_v27  }
  0x92   :  { %110 = vst.msk [vmem:[%s222_s1 + $0xc] ss:$16 sm:$0x3] %vm7_vm0, %v77_v28  }
  0x94   :  { %v83_v29 = vpop.permute.xlu0 %82  }
  0x95   :  { %v89_v30 = vpop.permute.xlu1 %88   ;;  %111 = vst.msk [vmem:[%s222_s1 + $0xd] ss:$16 sm:$0x3] %vm7_vm0, %v83_v29  }
  0x96   :  { %112 = vst.msk [vmem:[%s222_s1 + $0xe] ss:$16 sm:$0x3] %vm7_vm0, %v89_v30  }
  0x98   :  { %v95_v31 = vpop.permute.xlu0 %94  }
  0x99   :  { %113 = vst.msk [vmem:[%s222_s1 + $0xf] ss:$16 sm:$0x3] %vm7_vm0, %v95_v31  }

// kernel: conv_ae_forward.2
= control target key start
LH: loop header
LB: loop body
LE: loop exit
PB: predicated region body
PF: predicated region fallthrough
CT: control target
= control target key end

     0   :  { %s1050_s30 = smov 0   ;;  %s1134_s0 = inlined_call_operand.vmem [shape: f32[2,16,4], index: 0, kind: input, shape index: {}]   ;;  %s1135_s1 = inlined_call_operand.vmem [shape: f32[2,4,32], index: 1, kind: input, shape index: {}]   ;;  %s1136_s2 = inlined_call_operand.vmem [shape: f32[1,32], index: 2, kind: input, shape index: {}]   ;;  %s1137_s3 = inlined_call_operand.vmem [shape: f32[32,32], index: 3, kind: input, shape index: {}]   ;;  %s1138_s4 = inlined_call_operand.vmem [shape: f32[1,32], index: 4, kind: input, shape index: {}]   ;;  %s1139_s5 = inlined_call_operand.vmem [shape: f32[32,32], index: 5, kind: input, shape index: {}]   ;;  %s1140_s6 = inlined_call_operand.vmem [shape: f32[1,32], index: 6, kind: input, shape index: {}]   ;;  %s1141_s7 = inlined_call_operand.vmem [shape: f32[32,16], index: 7, kind: input, shape index: {}]   ;;  %s1142_s8 = inlined_call_operand.vmem [shape: f32[1,16], index: 8, kind: input, shape index: {}]   ;;  %s1143_s9 = inlined_call_operand.vmem [shape: f32[2,15,16], index: 9, kind: output, shape index: {}]  }
   0x1 LB: > { %s863_s10 = sadd.s32 4294967295, %s998_s30   ;;  %p867_p0 = scmp.ge.s32.totalorder %s998_s30, 1  ;;  %s998_s30 = sphi %s1050_s30, %s19_s30  }
   0x2   : > { %p287_p1 = scmp.lt.s32.totalorder %s998_s30, 3 }
   0x4   : > { %p288_p2 = pnand %p867_p0, %p287_p1 }
   0x5   : > { %v335_v0 = vld [vmem:[%s1135_s1] sm:$0xf] (!%p288_p2)  ;;  %vm343_vm0 = vcmask (!%p288_p2), 1043456   ;;  %p323_p3 = scmp.lt.s32.totalorder (!%p288_p2), %s863_s10, 1  ;;  %v875_v1 = vld [vmem:[%s1135_s1 + $0x4] sm:$0xf] (!%p288_p2) }
   0x6   : > { %291 = sbr.rel (%p288_p2) target bundleno = 897 (0x381), region = 56  ;;  %917 = vmatprep.subr.msk.mxu1 (!%p288_p2), %vm343_vm0, %v335_v0  ;;  %vm336_vm1 = vcmask (!%p288_p2), 31744   ;;  %v523_v4 = vld [vmem:[%s1137_s3] sm:$0xff] (!%p288_p2)  ;;  %v524_v5 = vld [vmem:[%s1137_s3 + $0x8] sm:$0xff] (!%p288_p2)  ;;  %v525_v7 = vld [vmem:[%s1137_s3 + $0x10] sm:$0xff] (!%p288_p2)  ;;  %vm504_vm2 = vcmask (!%p288_p2), 1046528  }
   0x7   : > { %918 = vmatpush3.msk.msra.mxu1 (!%p288_p2), %vm343_vm0, %v335_v0  ;;  %v960_v6 = vpack.c.bf16 (!%p288_p2), %v524_v5, %v523_v4  ;;  %v526_v8 = vld [vmem:[%s1137_s3 + $0x18] sm:$0xff] (!%p288_p2)  ;;  %v618_v10 = vld [vmem:[%s1139_s5] sm:$0xff] (!%p288_p2)  ;;  %v619_v11 = vld [vmem:[%s1139_s5 + $0x8] sm:$0xff] (!%p288_p2)  ;;  %vm534_vm3 = vcmask (!%p288_p2), 261120   ;;  %vm806_vm4 = vcmask (!%p288_p2), 129024   ;;  %vm804_vm5 = vcmask (!%p288_p2), 130048  }
   0x8   : > { %922 = vmatprep.subr.msk.mxu1 (!%p288_p2), %vm343_vm0, %v875_v1  ;;  %v964_v9 = vpack.c.bf16 (!%p288_p2), %v526_v8, %v525_v7  ;;  %v968_v12 = vpack.c.bf16 (!%p288_p2), %v619_v11, %v618_v10  ;;  %v879_v20 = vld [vmem:[%s1136_s2] ss:$0 sm:$0xff] (!%p288_p2)  ;;  %v620_v27 = vld [vmem:[%s1139_s5 + $0x10] sm:$0xff] (!%p288_p2)  ;;  %v621_v28 = vld [vmem:[%s1139_s5 + $0x18] sm:$0xff] (!%p288_p2) }
   0x9   : > { %961 = vmatprep.subr.bf16.mxu0 (!%p288_p2), %v960_v6  ;;  %v972_v29 = vpack.c.bf16 (!%p288_p2), %v621_v28, %v620_v27  ;;  %v712_v30 = vld [vmem:[%s1141_s7] sm:$0xff] (!%p288_p2)  ;;  %v713_v31 = vld [vmem:[%s1141_s7 + $0x8] sm:$0xff] (!%p288_p2)  ;;  %v714_v40 = vld [vmem:[%s1141_s7 + $0x10] sm:$0xff] (!%p288_p2) }
   0xa   : > { %963 = vmatpush3.bf16.msra.mxu0 (!%p288_p2), %v960_v6  ;;  %v976_v32 = vpack.c.bf16 (!%p288_p2), %v713_v31, %v712_v30  ;;  %v880_v33 = vld [vmem:[%s1138_s4] ss:$0 sm:$0xff] (!%p288_p2)  ;;  %v715_v41 = vld [vmem:[%s1141_s7 + $0x18] sm:$0xff] (!%p288_p2) }
   0xb   : > { %965 = vmatprep.subr.bf16.mxu0 (!%p288_p2), %v964_v9  ;;  %v980_v42 = vpack.c.bf16 (!%p288_p2), %v715_v41, %v714_v40  ;;  %v883_v43 = vld [vmem:[%s1140_s6] ss:$0 sm:$0xff] (!%p288_p2) }
   0xc   : > { %v886_v50 = vld [vmem:[%s1142_s8] ss:$0 sm:$0xff] (!%p288_p2) }
   0xd   : > { %s1145_s10 = smov (!%p323_p3, %s863_s10), 1 }
   0xe   : > { %s891_s15 = sshll.u32 %s1145_s10, 4  ;;  %967 = vmatpush3.bf16.msra.mxu0 %v964_v9 }
   0xf   : > { %s327_s18 = scalar_lea.vmem %s1134_s0, %s891_s15  ;;  %977 = vmatprep.subr.bf16.mxu0 %v976_v32  ;;  %s332_s17 = scalar_lea.vmem %s1143_s9, %s891_s15 }
  0x10   : > { %v333_v2 = vld [vmem:[%s327_s18] sm:$0xff]  ;;  %v334_v3 = vld [vmem:[%s327_s18 + $0x8] sm:$0xff] }
  0x11   : > { %919 = vmatprep.mubr.msk.f32.mxu1 %vm336_vm1, %v333_v2 }
  0x12   : > { %920 = vmatmul.mubr.msk.f32.vlgmr.msra.gmra.mrb[0].mxu1 %vm336_vm1, %v334_v3 }
  0x13   : > { %923 = vmatpush3.msk.msra.mxu1 %vm343_vm0, %v875_v1  ;;  %924 = vmatprep.mubr.msk.f32.mxu1 %vm336_vm1, %v333_v2 }
  0x14   : > { %969 = vmatprep.subr.bf16.mxu1 %v968_v12 }
  0x16   : > { %925 = vmatmul.mubr.msk.f32.vlgmr.msra.gmra.mrb[2].mxu1 %vm336_vm1, %v334_v3 }
  0x17   : > { %971 = vmatpush3.bf16.msra.mxu1 %v968_v12 }
  0x18   : > { %973 = vmatprep.subr.bf16.mxu1 %v972_v29 }
  0x1b   : > { %975 = vmatpush3.bf16.msra.mxu1 %v972_v29 }
  0xe5   : > { %v921_v13 = vpop.f32.mrb[0].mxu1 }
  0xe6   : > { %v413_v14 = vpop.f32.mrb[1].mxu1 }
  0xe9   : > { %v926_v15 = vpop.f32.mrb[2].mxu1 }
  0xea   : > { %v506_v16 = vrot.slane %v926_v15, 1  ;;  %v493_v17 = vpop.f32.mrb[3].mxu1 }
  0xeb   : > { %v505_v18 = vrot.slane %v493_v17, 1 }
  0xec   : > { %v511_v19 = vadd.f32 %v921_v13, %v506_v16 }
  0xed   : > { %v507_v21 = vsel %vm504_vm2, %v505_v18, %v506_v16 }
  0xee   : > { %v510_v22 = vadd.f32 %v507_v21, %v413_v14  ;;  %v520_v23 = vadd.f32 %v879_v20, %v511_v19 }
  0xf0   : > { %v519_v24 = vadd.f32 %v879_v20, %v510_v22  ;;  %v522_v26 = vmax.f32 %v520_v23, 0.0 }
  0xf2   : > { %v521_v25 = vmax.f32 %v519_v24, 0.0 }
  0xf4   : > { %935 = vmatprep.mubr.msk.f32.mxu0 %vm534_vm3, %v521_v25 }
  0xf5   : > { %936 = vmatmul.mubr.msk.f32.vlgmr.msra.gmra.mrb[0].mxu0 %vm534_vm3, %v522_v26 }
  0xf6   : > { %979 = vmatpush3.bf16.msra.mxu0 %v976_v32 }
  0xf7   : > { %981 = vmatprep.subr.bf16.mxu0 %v980_v42 }
  0xfa   : > { %983 = vmatpush3.bf16.msra.mxu0 %v980_v42 }
 0x1c8   : > { %v937_v34 = vpop.f32.mrb[0].mxu0 }
 0x1c9   : > { %v613_v35 = vadd.f32 %v937_v34, %v880_v33  ;;  %v607_v36 = vpop.f32.mrb[1].mxu0 }
 0x1ca   : > { %v608_v37 = vadd.f32 %v880_v33, %v607_v36 }
 0x1cb   : > { %v617_v39 = vmax.f32 %v613_v35, 0.0 }
 0x1cc   : > { %v616_v38 = vmax.f32 %v608_v37, 0.0 }
 0x1ce   : > { %946 = vmatprep.mubr.msk.f32.mxu1 %vm534_vm3, %v616_v38 }
 0x1cf   : > { %947 = vmatmul.mubr.msk.f32.vlgmr.msra.gmra.mrb[4].mxu1 %vm534_vm3, %v617_v39 }
 0x2a2   : > { %v948_v44 = vpop.f32.mrb[4].mxu1 }
 0x2a3   : > { %v707_v45 = vadd.f32 %v948_v44, %v883_v43  ;;  %v701_v46 = vpop.f32.mrb[5].mxu1 }
 0x2a4   : > { %v702_v47 = vadd.f32 %v883_v43, %v701_v46 }
 0x2a5   : > { %v711_v49 = vmax.f32 %v707_v45, 0.0 }
 0x2a6   : > { %v710_v48 = vmax.f32 %v702_v47, 0.0 }
 0x2a8   : > { %957 = vmatprep.mubr.msk.f32.mxu0 %vm534_vm3, %v710_v48 }
 0x2a9   : > { %958 = vmatmul.mubr.msk.f32.vlgmr.msra.gmra.mrb[2].mxu0 %vm534_vm3, %v711_v49 }
 0x37c   : > { %v959_v51 = vpop.f32.mrb[2].mxu0 }
 0x37d   : > { %v801_v52 = vadd.f32 %v959_v51, %v886_v50  ;;  %v795_v53 = vpop.f32.mrb[3].mxu0 }
 0x37e   : > { %v796_v54 = vadd.f32 %v886_v50, %v795_v53 }
 0x37f   : > { %807 = vst.msk [vmem:[%s332_s17 + $0x8] sm:$0x7f] %vm806_vm4, %v801_v52 }
 0x380   : > { %805 = vst.msk [vmem:[%s332_s17] sm:$0xff] %vm804_vm5, %v796_v54 }
 0x381 PF: > { %s19_s30 = sadd.s32 1, %s998_s30  }
 0x382   : > { %p16_p4 = scmp.ge.s32.totalorder %s19_s30, 4  }
 0x384   :  { %18 = sbr.rel (!%p16_p4) target bundleno = 1 (0x1), region = 87 }

// kernel: conv_ae_forward.3
= control target key start
LH: loop header
LB: loop body
LE: loop exit
PB: predicated region body
PF: predicated region fallthrough
CT: control target
= control target key end

     0   :  { %s1192_s11 = smov 0   ;;  %s1293_s0 = inlined_call_operand.vmem [shape: f32[2,15,16], index: 0, kind: input, shape index: {}]   ;;  %s1294_s1 = inlined_call_operand.vmem [shape: f32[2,16,32], index: 1, kind: input, shape index: {}]   ;;  %s1295_s2 = inlined_call_operand.vmem [shape: f32[1,32], index: 2, kind: input, shape index: {}]   ;;  %s1296_s3 = inlined_call_operand.vmem [shape: f32[32,32], index: 3, kind: input, shape index: {}]   ;;  %s1297_s4 = inlined_call_operand.vmem [shape: f32[1,32], index: 4, kind: input, shape index: {}]   ;;  %s1298_s5 = inlined_call_operand.vmem [shape: f32[32,32], index: 5, kind: input, shape index: {}]   ;;  %s1299_s6 = inlined_call_operand.vmem [shape: f32[1,32], index: 6, kind: input, shape index: {}]   ;;  %s1300_s7 = inlined_call_operand.vmem [shape: f32[2,32,4], index: 7, kind: input, shape index: {}]   ;;  %s1301_s8 = inlined_call_operand.<no memory space> [shape: f32[1,1], index: 8, kind: input, shape index: {}]   ;;  %s1302_s9 = inlined_call_operand.vmem [shape: f32[2,13,4], index: 9, kind: output, shape index: {}]  }
   0x1   :  { %v14_v0 = vstv %s1301_s8 }
   0x2   :  { %15 = vst [vmem:[#allocation2] sm:$0x1] %v14_v0 }
   0x3 LB: > { %s955_s12 = sadd.s32 4294967295, %s1136_s11   ;;  %p959_p0 = scmp.ge.s32.totalorder %s1136_s11, 1  ;;  %s1136_s11 = sphi %s1192_s11, %s21_s11  }
   0x4   : > { %p289_p1 = scmp.lt.s32.totalorder %s1136_s11, 3 }
   0x6   : > { %p290_p2 = pnand %p959_p0, %p289_p1 }
   0x7   : > { %v966_v1 = vld [vmem:[%s1294_s1 + $0x10] sm:$0xff] (!%p290_p2)  ;;  %v967_v2 = vld [vmem:[%s1294_s1 + $0x18] sm:$0xff] (!%p290_p2)  ;;  %v337_v3 = vld [vmem:[%s1294_s1] sm:$0xff] (!%p290_p2)  ;;  %p325_p3 = scmp.lt.s32.totalorder (!%p290_p2), %s955_s12, 1  ;;  %vm339_vm0 = vcmask (!%p290_p2), 130048   ;;  %vm501_vm1 = vcmask (!%p290_p2), 1046528  }
   0x8   : > { %293 = sbr.rel (%p290_p2) target bundleno = 900 (0x384), region = 56  ;;  %v1084_v4 = vpack.c.bf16 (!%p290_p2), %v967_v2, %v966_v1  ;;  %v338_v5 = vld [vmem:[%s1294_s1 + $0x8] sm:$0xff] (!%p290_p2)  ;;  %v520_v9 = vld [vmem:[%s1296_s3] sm:$0xff] (!%p290_p2)  ;;  %v522_v12 = vld [vmem:[%s1296_s3 + $0x10] sm:$0xff] (!%p290_p2)  ;;  %vm531_vm2 = vcmask (!%p290_p2), 261120   ;;  %v1138_v55 = vmov (!%p290_p2), 0  }
   0x9   : > { %v1080_v6 = vpack.c.bf16 (!%p290_p2), %v338_v5, %v337_v3  ;;  %v521_v10 = vld [vmem:[%s1296_s3 + $0x8] sm:$0xff] (!%p290_p2)  ;;  %v523_v13 = vld [vmem:[%s1296_s3 + $0x18] sm:$0xff] (!%p290_p2)  ;;  %v615_v15 = vld [vmem:[%s1298_s5] sm:$0xff] (!%p290_p2)  ;;  %1129 = vset.pattern.permute.xlu0 (!%p290_p2), %v1138_v55  ;;  %vm876_vm3 = vcmask (!%p290_p2), 1040384   ;;  %vm896_vm4 = vcmask (!%p290_p2), 31745   ;;  %vm898_vm5 = vcmask (!%p290_p2), 29696  }
   0xa   : > { %1085 = vmatprep.subr.bf16.mxu1 (!%p290_p2), %v1084_v4  ;;  %v1088_v11 = vpack.c.bf16 (!%p290_p2), %v521_v10, %v520_v9  ;;  %v1092_v14 = vpack.c.bf16 (!%p290_p2), %v523_v13, %v522_v12  ;;  %v616_v16 = vld [vmem:[%s1298_s5 + $0x8] sm:$0xff] (!%p290_p2)  ;;  %v970_v25 = vld [vmem:[%s1295_s2] ss:$0 sm:$0xff] (!%p290_p2)  ;;  %v617_v32 = vld [vmem:[%s1298_s5 + $0x10] sm:$0xff] (!%p290_p2) }
   0xb   : > { %1087 = vmatpush3.bf16.msra.mxu1 (!%p290_p2), %v1084_v4  ;;  %1081 = vmatprep.subr.bf16.mxu0 (!%p290_p2), %v1080_v6  ;;  %v1096_v17 = vpack.c.bf16 (!%p290_p2), %v616_v16, %v615_v15  ;;  %v618_v33 = vld [vmem:[%s1298_s5 + $0x18] sm:$0xff] (!%p290_p2)  ;;  %v709_v35 = vld [vmem:[%s1300_s7] sm:$0xff] (!%p290_p2)  ;;  %v710_v36 = vld [vmem:[%s1300_s7 + $0x8] sm:$0xff] (!%p290_p2) }
   0xc   : > { %1083 = vmatpush3.bf16.msra.mxu0 (!%p290_p2), %v1080_v6  ;;  %v1100_v34 = vpack.c.bf16 (!%p290_p2), %v618_v33, %v617_v32  ;;  %v979_v37 = vld [vmem:[%s1300_s7 + $0x20] sm:$0xff] (!%p290_p2)  ;;  %v1104_v38 = vpack.c.bf16 (!%p290_p2), %v710_v36, %v709_v35  ;;  %v980_v39 = vld [vmem:[%s1300_s7 + $0x28] sm:$0xff] (!%p290_p2)  ;;  %v711_v48 = vld [vmem:[%s1300_s7 + $0x10] sm:$0xff] (!%p290_p2) }
   0xd   : > { %1089 = vmatprep.subr.bf16.mxu0 (!%p290_p2), %v1088_v11  ;;  %1097 = vmatprep.subr.bf16.mxu1 (!%p290_p2), %v1096_v17  ;;  %v1112_v40 = vpack.c.bf16 (!%p290_p2), %v980_v39, %v979_v37  ;;  %v971_v41 = vld [vmem:[%s1297_s4] ss:$0 sm:$0xff] (!%p290_p2)  ;;  %v712_v49 = vld [vmem:[%s1300_s7 + $0x18] sm:$0xff] (!%p290_p2)  ;;  %v981_v51 = vld [vmem:[%s1300_s7 + $0x30] sm:$0xff] (!%p290_p2) }
   0xe   : > { %v1108_v50 = vpack.c.bf16 (!%p290_p2), %v712_v49, %v711_v48  ;;  %v982_v52 = vld [vmem:[%s1300_s7 + $0x38] sm:$0xff] (!%p290_p2)  ;;  %v985_v54 = vld [vmem:[#allocation2] ss:$0 sm:$0xff] (!%p290_p2) }
   0xf   : > { %s1304_s12 = smov (!%p325_p3, %s955_s12), 1  ;;  %v1116_v53 = vpack.c.bf16 %v982_v52, %v981_v51  ;;  %891 = vperm.xlu0 %1129, %v985_v54   ;;  %v974_v56 = vld [vmem:[%s1299_s6] ss:$0 sm:$0xff] }
  0x10   : > { %s988_s20 = sshll.u32 %s1304_s12, 4 }
  0x11   : > { %s329_s23 = scalar_lea.vmem %s1293_s0, %s988_s20  ;;  %s334_s26 = scalar_lea.vmem %s1302_s9, %s988_s20 }
  0x12   : > { %v335_v7 = vld [vmem:[%s329_s23] sm:$0xff]  ;;  %v336_v8 = vld [vmem:[%s329_s23 + $0x8] sm:$0x7f] }
  0x13   : > { %1033 = vmatprep.mubr.msk.f32.mxu1 %vm339_vm0, %v335_v7  ;;  %1026 = vmatprep.mubr.msk.f32.mxu0 %vm339_vm0, %v335_v7 }
  0x14   : > { %1034 = vmatmul.mubr.msk.f32.vlgmr.msra.gmra.mrb[0].mxu1 %vm339_vm0, %v336_v8  ;;  %1027 = vmatmul.mubr.msk.f32.vlgmr.msra.gmra.mrb[0].mxu0 %vm339_vm0, %v336_v8 }
  0x15   : > { %1091 = vmatpush3.bf16.msra.mxu0 %v1088_v11  ;;  %1099 = vmatpush3.bf16.msra.mxu1 %v1096_v17 }
  0x16   : > { %1093 = vmatprep.subr.bf16.mxu0 %v1092_v14  ;;  %1101 = vmatprep.subr.bf16.mxu1 %v1100_v34 }
  0x19   : > { %1095 = vmatpush3.bf16.msra.mxu0 %v1092_v14  ;;  %1103 = vmatpush3.bf16.msra.mxu1 %v1100_v34 }
  0x1a   : > { %1105 = vmatprep.subr.bf16.mxu0 %v1104_v38  ;;  %1113 = vmatprep.subr.bf16.mxu1 %v1112_v40 }
  0x8e   : > { %v892_v5 = vpop.permute.xlu0 %891 }
  0xe7   : > { %v1035_v18 = vpop.f32.mrb[0].mxu1  ;;  %v1028_v19 = vpop.f32.mrb[0].mxu0 }
  0xe8   : > { %v503_v20 = vrot.slane %v1035_v18, 1  ;;  %v490_v21 = vpop.f32.mrb[1].mxu1  ;;  %v412_v22 = vpop.f32.mrb[1].mxu0 }
  0xe9   : > { %v502_v23 = vrot.slane %v490_v21, 1 }
  0xea   : > { %v508_v24 = vadd.f32 %v1028_v19, %v503_v20 }
  0xeb   : > { %v504_v26 = vsel %vm501_vm1, %v502_v23, %v503_v20 }
  0xec   : > { %v507_v27 = vadd.f32 %v504_v26, %v412_v22  ;;  %v517_v28 = vadd.f32 %v970_v25, %v508_v24 }
  0xee   : > { %v516_v29 = vadd.f32 %v970_v25, %v507_v27  ;;  %v519_v31 = vmax.f32 %v517_v28, 0.0 }
  0xf0   : > { %v518_v30 = vmax.f32 %v516_v29, 0.0 }
  0xf2   : > { %1044 = vmatprep.mubr.msk.f32.mxu0 %vm531_vm2, %v518_v30 }
  0xf3   : > { %1045 = vmatmul.mubr.msk.f32.vlgmr.msra.gmra.mrb[2].mxu0 %vm531_vm2, %v519_v31 }
  0xf4   : > { %1107 = vmatpush3.bf16.msra.mxu0 %v1104_v38 }
  0xf5   : > { %1109 = vmatprep.subr.bf16.mxu0 %v1108_v50 }
  0xf8   : > { %1111 = vmatpush3.bf16.msra.mxu0 %v1108_v50 }
 0x1c6   : > { %v1046_v42 = vpop.f32.mrb[2].mxu0 }
 0x1c7   : > { %v610_v43 = vadd.f32 %v1046_v42, %v971_v41  ;;  %v604_v44 = vpop.f32.mrb[3].mxu0 }
 0x1c8   : > { %v605_v45 = vadd.f32 %v971_v41, %v604_v44 }
 0x1c9   : > { %v614_v47 = vmax.f32 %v610_v43, 0.0 }
 0x1ca   : > { %v613_v46 = vmax.f32 %v605_v45, 0.0 }
 0x1cc   : > { %1055 = vmatprep.mubr.msk.f32.mxu1 %vm531_vm2, %v613_v46 }
 0x1cd   : > { %1056 = vmatmul.mubr.msk.f32.vlgmr.msra.gmra.mrb[2].mxu1 %vm531_vm2, %v614_v47 }
 0x1ce   : > { %1115 = vmatpush3.bf16.msra.mxu1 %v1112_v40 }
 0x1cf   : > { %1117 = vmatprep.subr.bf16.mxu1 %v1116_v53 }
 0x1d2   : > { %1119 = vmatpush3.bf16.msra.mxu1 %v1116_v53 }
 0x2a0   : > { %v1057_v57 = vpop.f32.mrb[2].mxu1 }
 0x2a1   : > { %v704_v58 = vadd.f32 %v1057_v57, %v974_v56  ;;  %v698_v59 = vpop.f32.mrb[3].mxu1 }
 0x2a2   : > { %v699_v60 = vadd.f32 %v974_v56, %v698_v59 }
 0x2a3   : > { %v708_v62 = vmax.f32 %v704_v58, 0.0 }
 0x2a4   : > { %v707_v61 = vmax.f32 %v699_v60, 0.0 }
 0x2a6   : > { %1066 = vmatprep.mubr.msk.f32.mxu0 %vm531_vm2, %v707_v61  ;;  %1077 = vmatprep.mubr.msk.f32.mxu1 %vm531_vm2, %v707_v61 }
 0x2a7   : > { %1067 = vmatmul.mubr.msk.f32.vlgmr.msra.gmra.mrb[4].mxu0 %vm531_vm2, %v708_v62  ;;  %1078 = vmatmul.mubr.msk.f32.vlgmr.msra.gmra.mrb[4].mxu1 %vm531_vm2, %v708_v62 }
 0x37a   : > { %v1068_v63 = vpop.f32.mrb[4].mxu0  ;;  %v1079_v0 = vpop.f32.mrb[4].mxu1 }
 0x37b   : > { %v878_v1 = vrot.slane %v1079_v0, 7  ;;  %v785_v2 = vpop.f32.mrb[5].mxu0  ;;  %v865_v3 = vpop.f32.mrb[5].mxu1 }
 0x37c   : > { %v877_v4 = vrot.slane %v865_v3, 7 }
 0x37e   : > { %v882_v6 = vadd.f32 %v877_v4, %v785_v2  ;;  %v879_v7 = vsel %vm876_vm3, %v877_v4, %v878_v1 }
 0x37f   : > { %v883_v8 = vadd.f32 %v1068_v63, %v879_v7 }
 0x380   : > { %v894_v9 = vadd.f32 %v892_v5, %v882_v6 }
 0x381   : > { %v895_v10 = vadd.f32 %v892_v5, %v883_v8 }
 0x382   : > { %897 = vst.msk [vmem:[%s334_s26 - $0x1] sm:$0xfe] %vm896_vm4, %v894_v9 }
 0x383   : > { %899 = vst.msk [vmem:[%s334_s26 + $0x7] sm:$0x3f] %vm898_vm5, %v895_v10 }
 0x384 PF: > { %s21_s11 = sadd.s32 1, %s1136_s11  }
 0x385   : > { %p18_p4 = scmp.ge.s32.totalorder %s21_s11, 4  }
 0x387   :  { %20 = sbr.rel (!%p18_p4) target bundleno = 3 (0x3), region = 88 }

</bundles_post_ra>
